<compile_context>
chip_gen: v7x
topology: tpu7x:2x2x1
jax: 0.10.0
libtpu: 0.0.40
codegen_flags: <defaults>
</compile_context>

<pallas_src>
import jax
import jax.numpy as jnp
from jax.experimental import pallas as pl
from jax.experimental.pallas import tpu as pltpu

_LANE_CANDIDATES = (1024, 512, 256, 128)  # lane-dense widths (multiples of 128)
_VMEM_LIMIT_BYTES = 40 << 20              # explicit scoped-VMEM budget (< 64 MiB physical on v7x)


def _b_kernel(x_ref, o_ref):
    # Elementwise VPU hot path: y = x * 3 + 1 (weak-typed literals keep dtype).
    o_ref[...] = x_ref[...] * 3 + 1


def _sublane_pack(itemsize: int) -> int:
    # Sublane packing factor per element width: f32 -> 8, bf16 -> 16, int8/fp8 -> 32.
    return {4: 8, 2: 16, 1: 32}.get(itemsize, 8)


def _block_bytes_for_chip() -> int:
    # ~8 MiB blocks -> 4x-buffered live VMEM ~32 MiB, safe on v5e/v6e (128 MiB
    # physical VMEM) and v7x (64 MiB physical) once vmem_limit_bytes is raised.
    try:
        vmem_cap = pltpu.get_tpu_info().vmem_capacity_bytes
    except Exception:
        vmem_cap = 64 << 20
    if vmem_cap >= (64 << 20):
        return 8 << 20
    # Unknown / small-VMEM part: stay conservative.
    return 2 << 20


def _run_slab(slab: jax.Array, *, donate_input: bool) -> jax.Array:
    """Run y = x*3 + 1 on a lane-dense 2D (rows, lanes) slab."""
    rows, lanes = slab.shape
    itemsize = jnp.dtype(slab.dtype).itemsize
    sub = _sublane_pack(itemsize)

    block_bytes = _block_bytes_for_chip()
    target_rows = max(sub, (block_bytes // (lanes * itemsize)) // sub * sub)
    block_rows = rows if rows <= target_rows else target_rows

    # Keep >= ~4 grid steps for larger inputs so the v7x second TensorCore is
    # engaged via the "parallel" axis and the DMA pipeline has work to overlap.
    # Worst case this adds a few ~0.35us steps on single-core parts.
    total_bytes = rows * lanes * itemsize
    if total_bytes >= (1 << 20) and rows >= 4 * sub:
        cap = max(sub, ((rows // 4) // sub) * sub)
        block_rows = min(block_rows, cap)

    grid = (pl.cdiv(rows, block_rows),)

    cost = pl.CostEstimate(
        flops=2 * rows * lanes,
        transcendentals=0,
        bytes_accessed=2 * total_bytes,
    )

    return pl.pallas_call(
        _b_kernel,
        out_shape=jax.ShapeDtypeStruct((rows, lanes), slab.dtype),
        grid_spec=pltpu.PrefetchScalarGridSpec(
            num_scalar_prefetch=0,
            grid=grid,
            in_specs=[pl.BlockSpec((block_rows, lanes), lambda i: (i, 0))],
            out_specs=pl.BlockSpec((block_rows, lanes), lambda i: (i, 0)),
        ),
        compiler_params=pltpu.CompilerParams(
            dimension_semantics=("parallel",),
            vmem_limit_bytes=_VMEM_LIMIT_BYTES,
        ),
        cost_estimate=cost,
        input_output_aliases=({0: 0} if donate_input else {}),
    )(slab)


def b_forward(x: jax.Array, *, donate_input: bool = False) -> jax.Array:
    """B.forward(x) = (x * 3) + 1 via a lane-dense Pallas TPU kernel.

    donate_input=True aliases the kernel output onto the input HBM buffer
    (input_output_aliases={0: 0}).  Only enable it when the caller actually
    donates x (e.g. jax.jit(..., donate_argnums=0)); otherwise XLA inserts a
    defensive copy that costs an extra HBM pass.
    """
    orig_shape = x.shape
    n = x.size
    if n == 0:
        return x

    flat = x.reshape(-1)

    # Widest lane-dense width that divides n exactly: no padding, no post-slice.
    lanes = next((l for l in _LANE_CANDIDATES if n % l == 0), None)

    if lanes is not None:
        out = _run_slab(flat.reshape(n // lanes, lanes), donate_input=donate_input)
        return out.reshape(orig_shape)

    # Unaligned size: kernel on the 1024-aligned prefix, tiny XLA tail.
    n_main = (n // 1024) * 1024
    if n_main == 0:
        # Tiny input: a kernel launch is not worth it.
        return (x * 3 + 1).astype(x.dtype)
    out_main = _run_slab(
        flat[:n_main].reshape(n_main // 1024, 1024), donate_input=donate_input
    ).reshape(-1)
    out_tail = flat[n_main:] * 3 + 1
    return jnp.concatenate([out_main, out_tail]).reshape(orig_shape)


if __name__ == "__main__":
    key = jax.random.PRNGKey(0)

    # Primary input: small NCHW tensor consistent with the module's usage.
    x = jax.random.normal(key, (2, 4, 16, 16), dtype=jnp.float32)
    y = b_forward(x)
    jax.block_until_ready(y)
    y_ref = x * 3 + 1
    assert y.shape == x.shape and y.dtype == x.dtype
    assert jnp.allclose(y, y_ref, atol=1e-6, rtol=1e-6)

    # Extra sanity checks covering the other wrapper paths (no pad anywhere):
    #   * 128-divisible but not 1024-divisible size.
    x2 = jax.random.normal(jax.random.PRNGKey(1), (5, 128), dtype=jnp.float32)
    y2 = b_forward(x2)
    jax.block_until_ready(y2)
    assert jnp.allclose(y2, x2 * 3 + 1, atol=1e-6, rtol=1e-6)
    #   * Fully unaligned size -> aligned-prefix kernel + XLA tail.
    x3 = jax.random.normal(jax.random.PRNGKey(2), (3, 411), dtype=jnp.float32)
    y3 = b_forward(x3)
    jax.block_until_ready(y3)
    assert jnp.allclose(y3, x3 * 3 + 1, atol=1e-6, rtol=1e-6)

    print("KERNEL_OK")
</pallas_src>

<mosaic_0001>
module attributes {stable_mosaic.version = 11 : i64} {
  func.func @_b_kernel(%arg0: i32, %arg1: memref<2x1024xf32, #tpu.memory_space<vmem>>, %arg2: memref<2x1024xf32, #tpu.memory_space<vmem>>) attributes {dimension_semantics = [#tpu.dimension_semantics<parallel>], iteration_bounds = array<i64: 1>, scalar_prefetch = 0 : i64, scratch_operands = 0 : i64, tpu.core_type = #tpu.core_type<tc>, window_params = [{transform_indices = @transform_0, window_bounds = array<i64: 2, 1024>}, {transform_indices = @transform_1, window_bounds = array<i64: 2, 1024>}]} {
    %c0 = arith.constant 0 : index
    %c0_0 = arith.constant 0 : index
    %0 = vector.load %arg1[%c0, %c0_0] : memref<2x1024xf32, #tpu.memory_space<vmem>>, vector<2x1024xf32>
    %cst = arith.constant 3.000000e+00 : f32
    %1 = vector.broadcast %cst : f32 to vector<2x1024xf32>
    %2 = arith.mulf %0, %1 : vector<2x1024xf32>
    %cst_1 = arith.constant 1.000000e+00 : f32
    %3 = vector.broadcast %cst_1 : f32 to vector<2x1024xf32>
    %4 = arith.addf %2, %3 : vector<2x1024xf32>
    %c0_2 = arith.constant 0 : index
    %c0_3 = arith.constant 0 : index
    %5 = vector.load %arg2[%c0_2, %c0_3] : memref<2x1024xf32, #tpu.memory_space<vmem>>, vector<2x1024xf32>
    tpu.vector_store %arg2[%c0_2, %c0_3], %4 {strides = array<i32>} : memref<2x1024xf32, #tpu.memory_space<vmem>>, vector<2x1024xf32>,
    return
  }
  func.func @transform_0(%arg0: i32) -> (i32, i32) {
    %c0_i32 = arith.constant 0 : i32
    %c0_i32_0 = arith.constant 0 : i32
    return %arg0, %c0_i32 : i32, i32
  }
  func.func @transform_1(%arg0: i32) -> (i32, i32) {
    %c0_i32 = arith.constant 0 : i32
    %c0_i32_0 = arith.constant 0 : i32
    return %arg0, %c0_i32 : i32, i32
  }
}

</mosaic_0001>

<bundles_post_ra>
// kernel: tpu_custom_call.1
= control target key start
LH: loop header
LB: loop body
LE: loop exit
PB: predicated region body
PF: predicated region fallthrough
CT: control target
= control target key end

     0   :  { %6 = vsyncpa [#allocation3], 0  ;;  %s130_s0 = inlined_call_operand.hbm [shape: f32[2,1024], index: 0, kind: input, shape index: {}]   ;;  %s131_s1 = inlined_call_operand.hbm [shape: f32[2,1024], index: 1, kind: output, shape index: {}]  }
   0x1   :  { %7 = vsyncpa [#allocation4], 0  ;;  %s94_s6 = smov [#allocation2]   ;;  %s46_s10 = scalar_lea.hbm %s130_s0, 256 }
   0x2   :  { %s14_s7 = sshll.u32 %s94_s6, 4  ;;  %p47_p0 = scmp.ne.s32.totalorder %s130_s0, %s46_s10  ;;  %s15_s7 = int_to_ptr.vmem [resolvable:$true] %s14_s7 }
   0x3   :  { %p50_p1 = scmp.lt.u32.totalorder %s46_s10, %s130_s0 }
   0x5   :  { %p52_p2 = pnand %p50_p1, %p47_p0 }
   0x7   :  { %55 = shalt.err (!%p52_p2)
}
   0x8   :  { %s56_s15 = scalar_lea.vmem %s15_s7, 256  ;;  %p61_p4 = scmp.lt.s32.totalorder %s15_s7, %s15_s7 }
   0x9   :  { %p57_p3 = scmp.ne.s32.totalorder %s15_s7, %s56_s15  ;;  %p62_p5 = scmp.lt.s32.totalorder %s56_s15, %s56_s15 }
   0xb   :  { %p63_p6 = por %p62_p5, %p61_p4 }
   0xd   :  { %p64_p7 = pnand %p63_p6, %p57_p3 }
   0xf   :  { %67 = shalt.err (!%p64_p7)
}
  0x10   :  { %17 = dma.hbm_to_vmem [thread:$0]  %s130_s0, 256, %s15_s7, [#allocation3]  }
  0x11   :  { %90 = dma.done.wait [#allocation3], 256  }
  0x12   :  { %91 = vsyncadd [#allocation3], 4294967040  ;;  %v21_v0 = vld [vmem:[#allocation2] sm:$0xff]  ;;  %v22_v1 = vld [vmem:[#allocation2 + $0x8] sm:$0xff]  ;;  %s95_s18 = smov [#allocation5]  }
  0x13   :  { %s35_s19 = sshll.u32 %s95_s18, 4  ;;  %v23_v2 = vmul.f32 3.0, %v21_v0  ;;  %v24_v3 = vmul.f32 3.0, %v22_v1  ;;  %s36_s19 = int_to_ptr.vmem [resolvable:$true] %s35_s19 }
  0x14   :  { %s68_s20 = scalar_lea.vmem %s36_s19, 256  ;;  %p73_p9 = scmp.lt.s32.totalorder %s36_s19, %s36_s19 }
  0x15   :  { %v25_v4 = vadd.f32 1.0, %v23_v2  ;;  %v26_v5 = vadd.f32 1.0, %v24_v3  ;;  %p69_p8 = scmp.ne.s32.totalorder %s36_s19, %s68_s20  ;;  %p74_p10 = scmp.lt.s32.totalorder %s68_s20, %s68_s20 }
  0x17   :  { %27 = vst [vmem:[#allocation5] sm:$0xff] %v25_v4  ;;  %28 = vst [vmem:[#allocation5 + $0x8] sm:$0xff] %v26_v5  ;;  %p75_p11 = por %p74_p10, %p73_p9 }
  0x19   :  { %p76_p12 = pnand %p75_p11, %p69_p8 }
  0x1b   :  { %79 = shalt.err (!%p76_p12)
}
  0x1c   :  { %s80_s22 = scalar_lea.hbm %s131_s1, 256 }
  0x1d   :  { %p81_p13 = scmp.ne.s32.totalorder %s131_s1, %s80_s22  ;;  %p84_p0 = scmp.lt.u32.totalorder %s80_s22, %s131_s1 }
  0x1f   :  { %p86_p1 = pnand %p84_p0, %p81_p13 }
  0x21   :  { %89 = shalt.err (!%p86_p1)
}
  0x22   :  { %38 = dma.vmem_to_hbm [thread:$0]  %s36_s19, 256, %s131_s1, [#allocation4]  }
  0x23   :  { %92 = dma.done.wait [#allocation4], 256  }
  0x24   :  { %93 = vsyncadd [#allocation4], 4294967040 }
  0x25   :  { %42 = vsyncpa [#allocation3], 1 }
  0x26   :  { %43 = vsyncpa [#allocation4], 1 }

</bundles_post_ra>
